<compile_context>
chip_gen: v7x
topology: tpu7x:2x2x1
jax: 0.10.0
libtpu: 0.0.40
codegen_flags: <defaults>
</compile_context>

<pallas_src>
import functools

import jax
import jax.numpy as jnp
from jax.experimental import pallas as pl
from jax.experimental.pallas import tpu as pltpu


def _focal_loss_kernel(preds_ref, targs_ref, out_ref, *, gamma, hw, t_hw):
    j = pl.program_id(1)

    # Per-n accumulator lives in the (resident) output block: zero it at the
    # start of every batch row so the batch axis can run "parallel".
    @pl.when(j == 0)
    def _():
        out_ref[...] = jnp.zeros_like(out_ref)

    logits = preds_ref[0].astype(jnp.float32)         # (C, t_hw): classes on sublanes
    t = targs_ref[0]                                  # (1, t_hw) int32, lane-dense

    # numerically-stable log-sum-exp over the sublane (class) axis
    m = jnp.max(logits, axis=0, keepdims=True)        # (1, t_hw)
    shifted = logits - m                              # (C, t_hw)
    sum_e = jnp.sum(jnp.exp(shifted), axis=0, keepdims=True)  # (1, t_hw)

    # one-hot gather of the target-class logit: (C,1) iota broadcast vs targets
    cls_ids = jax.lax.broadcasted_iota(jnp.int32, (logits.shape[0], 1), 0)
    onehot = cls_ids == t                             # (C, t_hw) via lane broadcast
    tgt_shifted = jnp.sum(jnp.where(onehot, shifted, 0.0), axis=0, keepdims=True)

    ce = jnp.log(sum_e) - tgt_shifted                 # (1, t_hw), >= 0
    p_t = jnp.exp(-ce)                                # EUP; matches torch.exp(-ce_loss)
    base = 1.0 - p_t
    if gamma == 2.0:
        mod = base * base                             # cheap VPU mul, no pow
    else:
        mod = jnp.power(jnp.maximum(base, 0.0), gamma)
    focal = mod * ce                                  # (1, t_hw)

    if hw % t_hw != 0:
        # zero padded / out-of-range lanes (select -> NaN in dead lanes is safe)
        lane = jax.lax.broadcasted_iota(jnp.int32, focal.shape, 1)
        focal = jnp.where(j * t_hw + lane < hw, focal, 0.0)

    out_ref[...] += focal.reshape(out_ref.shape)      # lane-wide per-n accumulation


def focal_loss(preds, targs, gamma=2.0, *, t_hw=None, vmem_budget_bytes=8 << 20):
    """preds: (N, C, H, W) float logits (f32 or bf16); targs: (N, H, W) int classes."""
    # TODO(synk): per-class `weight` (as in nn.CrossEntropyLoss) not implemented;
    # the module's default weight=None path is what is reproduced here.
    N, C, H, W = preds.shape
    HW = H * W
    total = float(N * HW)

    # Pad the flattened spatial axis up to a multiple of 128 so every block
    # shape is legal and tiles stay lane-dense for any H, W.
    HW_pad = ((HW + 127) // 128) * 128

    in_itemsize = jnp.dtype(preds.dtype).itemsize
    if t_hw is None:
        # Real per-lane footprint: double-buffered preds + targets/out blocks
        # + in-kernel (C, t_hw)-sized temporaries (shifted, exp, onehot, where)
        # + a handful of (1, t_hw) f32 vectors.
        bytes_per_lane = C * (2 * in_itemsize + 16) + 48
        lanes_budget = max(128, vmem_budget_bytes // bytes_per_lane)
        t_hw = min(2048, (lanes_budget // 128) * 128)
    t_hw = max(128, min((t_hw // 128) * 128, HW_pad))
    num_hw = pl.cdiv(HW_pad, t_hw)

    # Free reshapes: NCHW is contiguous over (H, W); padding (if any) is one
    # cheap HBM copy and keeps tiles bounded and pipelined.
    preds3d = preds.reshape(N, C, HW)
    targs3d = targs.reshape(N, 1, HW).astype(jnp.int32)
    if HW_pad != HW:
        preds3d = jnp.pad(preds3d, ((0, 0), (0, 0), (0, HW_pad - HW)))
        targs3d = jnp.pad(targs3d, ((0, 0), (0, 0), (0, HW_pad - HW)))

    kernel = functools.partial(_focal_loss_kernel, gamma=float(gamma), hw=HW, t_hw=t_hw)

    # VMEM limit derived from the actual live set (inputs double-buffered,
    # output block, temporaries), capped below v7x's 64 MiB physical VMEM.
    in_bytes = 2 * C * t_hw * in_itemsize
    small_bytes = 2 * (t_hw * 4) * 2                       # targets + output blocks
    tmp_bytes = (4 * C + 8) * t_hw * 4                     # in-kernel temporaries
    vmem_limit = int(min(48 << 20, max(16 << 20,
                                       2 * (in_bytes + small_bytes + tmp_bytes))))

    cost = pl.CostEstimate(
        flops=int(N * HW_pad * (6 * C + 12)),
        transcendentals=int(N * HW_pad * (C + 1)),
        bytes_accessed=int(N * C * HW_pad * in_itemsize
                           + N * HW_pad * 4 + N * t_hw * 4),
    )

    partials = pl.pallas_call(
        kernel,
        out_shape=jax.ShapeDtypeStruct((N, 1, t_hw), jnp.float32),
        grid_spec=pltpu.PrefetchScalarGridSpec(
            num_scalar_prefetch=0,
            grid=(N, num_hw),
            in_specs=[
                pl.BlockSpec((1, C, t_hw), lambda n, j: (n, 0, j)),
                pl.BlockSpec((1, 1, t_hw), lambda n, j: (n, 0, j)),
            ],
            # Same block across j -> per-n resident accumulator; distinct per n.
            out_specs=pl.BlockSpec((1, 1, t_hw), lambda n, j: (n, 0, 0)),
        ),
        compiler_params=pltpu.CompilerParams(
            dimension_semantics=("parallel", "arbitrary"),
            vmem_limit_bytes=vmem_limit,
        ),
        cost_estimate=cost,
    )(preds3d, targs3d)

    # Tiny final reduction (N * t_hw elements) + mean in plain XLA.
    return jnp.sum(partials) / total


def _focal_loss_ref(preds, targs, gamma=2.0):
    # plain-JAX reference mirroring torch F.cross_entropy(reduction='none') + focal
    N, C, H, W = preds.shape
    logits = jnp.transpose(preds, (0, 2, 3, 1)).reshape(-1, C).astype(jnp.float32)
    t = targs.reshape(-1)
    lse = jax.scipy.special.logsumexp(logits, axis=-1)
    ce = lse - jnp.take_along_axis(logits, t[:, None], axis=-1)[:, 0]
    p_t = jnp.exp(-ce)
    return jnp.mean((1.0 - p_t) ** gamma * ce)


if __name__ == "__main__":
    key = jax.random.PRNGKey(0)
    k1, k2 = jax.random.split(key)

    N, C, H, W = 2, 4, 16, 16
    preds = jax.random.normal(k1, (N, C, H, W), dtype=jnp.float32)
    targs = jax.random.randint(k2, (N, H, W), 0, C, dtype=jnp.int32)

    out = focal_loss(preds, targs, gamma=2.0)
    out = jax.block_until_ready(out)

    ref = _focal_loss_ref(preds, targs, gamma=2.0)
    assert jnp.allclose(out, ref, rtol=1e-5, atol=1e-6), (out, ref)

    # also exercise the odd-HW padding path once (H*W not a multiple of 128)
    H2, W2 = 9, 13
    preds2 = jax.random.normal(k1, (N, C, H2, W2), dtype=jnp.float32)
    targs2 = jax.random.randint(k2, (N, H2, W2), 0, C, dtype=jnp.int32)
    out2 = jax.block_until_ready(focal_loss(preds2, targs2, gamma=2.0))
    ref2 = _focal_loss_ref(preds2, targs2, gamma=2.0)
    assert jnp.allclose(out2, ref2, rtol=1e-5, atol=1e-6), (out2, ref2)

    print("KERNEL_OK")
</pallas_src>

<mosaic_0001>
module attributes {stable_mosaic.version = 11 : i64} {
  func.func @_focal_loss_kernel(%arg0: i32, %arg1: i32, %arg2: memref<1x4x256xf32, #tpu.memory_space<vmem>>, %arg3: memref<1x1x256xi32, #tpu.memory_space<vmem>>, %arg4: memref<1x1x256xf32, #tpu.memory_space<vmem>>) attributes {dimension_semantics = [#tpu.dimension_semantics<parallel>, #tpu.dimension_semantics<arbitrary>], iteration_bounds = array<i64: 2, 1>, scalar_prefetch = 0 : i64, scratch_operands = 0 : i64, tpu.core_type = #tpu.core_type<tc>, window_params = [{transform_indices = @transform_0, window_bounds = array<i64: 1, 4, 256>}, {transform_indices = @transform_1, window_bounds = array<i64: 1, 1, 256>}, {transform_indices = @transform_2, window_bounds = array<i64: 1, 1, 256>}]} {
    %c0_i32 = arith.constant 0 : i32
    %0 = arith.cmpi eq, %arg1, %c0_i32 : i32
    %1 = arith.extui %0 : i1 to i32
    %c0_i32_0 = arith.constant 0 : i32
    %2 = arith.cmpi ne, %1, %c0_i32_0 : i32
    scf.if %2 {
      %cst_17 = arith.constant 0.000000e+00 : f32
      %35 = vector.broadcast %cst_17 : f32 to vector<1x1x256xf32>
      %c0_18 = arith.constant 0 : index
      %c0_19 = arith.constant 0 : index
      %c0_20 = arith.constant 0 : index
      %36 = vector.load %arg4[%c0_18, %c0_19, %c0_20] : memref<1x1x256xf32, #tpu.memory_space<vmem>>, vector<1x1x256xf32>
      tpu.vector_store %arg4[%c0_18, %c0_19, %c0_20], %35 {strides = array<i32>} : memref<1x1x256xf32, #tpu.memory_space<vmem>>, vector<1x1x256xf32>,
    } else {
    }
    %c0 = arith.constant 0 : index
    %c0_1 = arith.constant 0 : index
    %c0_2 = arith.constant 0 : index
    %3 = vector.load %arg2[%c0, %c0_1, %c0_2] : memref<1x4x256xf32, #tpu.memory_space<vmem>>, vector<1x4x256xf32>
    %4 = vector.shape_cast %3 : vector<1x4x256xf32> to vector<4x256xf32>
    %c0_3 = arith.constant 0 : index
    %c0_4 = arith.constant 0 : index
    %c0_5 = arith.constant 0 : index
    %5 = vector.load %arg3[%c0_3, %c0_4, %c0_5] : memref<1x1x256xi32, #tpu.memory_space<vmem>>, vector<1x1x256xi32>
    %6 = vector.shape_cast %5 : vector<1x1x256xi32> to vector<1x256xi32>
    %cst = arith.constant dense<0xFF800000> : vector<256xf32>
    %7 = vector.multi_reduction <maximumf>, %4, %cst [0] : vector<4x256xf32> to vector<256xf32>
    %8 = vector.shape_cast %7 : vector<256xf32> to vector<1x256xf32>
    %9 = vector.broadcast %8 : vector<1x256xf32> to vector<4x256xf32>
    %10 = arith.subf %4, %9 : vector<4x256xf32>
    %11 = math.exp %10 : vector<4x256xf32>
    %cst_6 = arith.constant dense<0.000000e+00> : vector<256xf32>
    %12 = vector.multi_reduction <add>, %11, %cst_6 [0] : vector<4x256xf32> to vector<256xf32>
    %13 = vector.shape_cast %12 : vector<256xf32> to vector<1x256xf32>
    %14 = tpu.iota {dimensions = array<i32: 0>} : vector<4x1xi32>
    %15 = vector.broadcast %14 : vector<4x1xi32> to vector<4x256xi32>
    %16 = vector.broadcast %6 : vector<1x256xi32> to vector<4x256xi32>
    %17 = arith.cmpi eq, %15, %16 : vector<4x256xi32>
    %cst_7 = arith.constant 0.000000e+00 : f32
    %18 = vector.broadcast %cst_7 : f32 to vector<4x256xf32>
    %19 = arith.select %17, %10, %18 : vector<4x256xi1>, vector<4x256xf32>
    %cst_8 = arith.constant dense<0.000000e+00> : vector<256xf32>
    %20 = vector.multi_reduction <add>, %19, %cst_8 [0] : vector<4x256xf32> to vector<256xf32>
    %21 = vector.shape_cast %20 : vector<256xf32> to vector<1x256xf32>
    %22 = math.log %13 : vector<1x256xf32>
    %23 = arith.subf %22, %21 : vector<1x256xf32>
    %cst_9 = arith.constant 0.000000e+00 : f32
    %24 = vector.broadcast %cst_9 : f32 to vector<1x256xf32>
    %25 = arith.subf %24, %23 : vector<1x256xf32>
    %26 = math.exp %25 : vector<1x256xf32>
    %cst_10 = arith.constant 1.000000e+00 : f32
    %27 = vector.broadcast %cst_10 : f32 to vector<1x256xf32>
    %28 = arith.subf %27, %26 : vector<1x256xf32>
    %29 = arith.mulf %28, %28 : vector<1x256xf32>
    %30 = arith.mulf %29, %23 : vector<1x256xf32>
    %c0_11 = arith.constant 0 : index
    %c0_12 = arith.constant 0 : index
    %c0_13 = arith.constant 0 : index
    %31 = vector.load %arg4[%c0_11, %c0_12, %c0_13] : memref<1x1x256xf32, #tpu.memory_space<vmem>>, vector<1x1x256xf32>
    %32 = vector.shape_cast %30 : vector<1x256xf32> to vector<1x1x256xf32>
    %33 = arith.addf %31, %32 : vector<1x1x256xf32>
    %c0_14 = arith.constant 0 : index
    %c0_15 = arith.constant 0 : index
    %c0_16 = arith.constant 0 : index
    %34 = vector.load %arg4[%c0_14, %c0_15, %c0_16] : memref<1x1x256xf32, #tpu.memory_space<vmem>>, vector<1x1x256xf32>
    tpu.vector_store %arg4[%c0_14, %c0_15, %c0_16], %33 {strides = array<i32>} : memref<1x1x256xf32, #tpu.memory_space<vmem>>, vector<1x1x256xf32>,
    return
  }
  func.func @transform_0(%arg0: i32, %arg1: i32) -> (i32, i32, i32) {
    %c0_i32 = arith.constant 0 : i32
    %c0_i32_0 = arith.constant 0 : i32
    return %arg0, %c0_i32, %arg1 : i32, i32, i32
  }
  func.func @transform_1(%arg0: i32, %arg1: i32) -> (i32, i32, i32) {
    %c0_i32 = arith.constant 0 : i32
    %c0_i32_0 = arith.constant 0 : i32
    return %arg0, %c0_i32, %arg1 : i32, i32, i32
  }
  func.func @transform_2(%arg0: i32, %arg1: i32) -> (i32, i32, i32) {
    %c0_i32 = arith.constant 0 : i32
    %c0_i32_0 = arith.constant 0 : i32
    %c0_i32_1 = arith.constant 0 : i32
    return %arg0, %c0_i32, %c0_i32_0 : i32, i32, i32
  }
}

</mosaic_0001>

<bundles_post_ra>
// kernel: tpu_custom_call.1
= control target key start
LH: loop header
LB: loop body
LE: loop exit
PB: predicated region body
PF: predicated region fallthrough
CT: control target
= control target key end

     0   :  { %7 = vsyncpa [#allocation3], 0  ;;  %s981_s0 = inlined_call_operand.hbm [shape: f32[2,4,256], index: 0, kind: input, shape index: {}]   ;;  %s982_s1 = inlined_call_operand.hbm [shape: s32[2,1,256], index: 1, kind: input, shape index: {}]   ;;  %s983_s2 = inlined_call_operand.hbm [shape: f32[2,1,256], index: 2, kind: output, shape index: {}]  }
   0x1   :  { %9 = vsyncpa [#allocation3 + $0x1], 0 }
   0x2   :  { %10 = vsyncpa [#allocation6], 0 }
   0x3   :  { %12 = vsyncpa [#allocation6 + $0x1], 0 }
   0x4   :  { %13 = vsyncpa [#allocation4], 0 }
   0x5   :  { %15 = vsyncpa [#allocation4 + $0x1], 0  ;;  %s739_s9 = smov 0   ;;  %s741_s10 = smov 0  }
   0x6   :  { %s743_s11 = smov 0   ;;  %s745_s12 = smov 0  }
   0x7   :  { %s747_s13 = smov 0   ;;  %s749_s14 = smov 0  }
   0x8 LB: > { %s469_s15 = sadd.s32 4294967295, %s717_s14   ;;  %s470_s16 = sadd.s32 4294967294, %s717_s14   ;;  %s717_s14 = sphi %s749_s14, %s21_s14   ;;  %s713_s13 = sphi %s747_s13, %s1005_s13   ;;  %s709_s12 = sphi %s745_s12, %s1004_s12   ;;  %s705_s11 = sphi %s743_s11, %s1003_s11   ;;  %s701_s10 = sphi %s741_s10, %s1002_s10   ;;  %s697_s9 = sphi %s739_s9, %s1001_s9  }
   0x9   : > { %s33_s17 = sadd.s32 1, %s713_s13  ;;  %s42_s18 = sadd.s32 1, %s705_s11 }
   0xa   : > { %p35_p0 = scmp.ge.s32.totalorder %s33_s17, 2  ;;  %p49_p1 = scmp.ne.s32.totalorder %s705_s11, %s701_s10 }
   0xb   : > { %p50_p2 = scmp.eq.s32.totalorder %s717_s14, 0  ;;  %p55_p3 = scmp.ne.s32.totalorder %s701_s10, %s697_s9 }
   0xc   : > { %s1007_s17 = smov (%p35_p0, %s33_s17), 0  ;;  %p56_p5 = scmp.eq.s32.totalorder %s469_s15, 0 }
   0xd   : > { %p780_p4 = por %p50_p2, %p49_p1  ;;  %s37_s20 = ssub.s32 %s713_s13, %s1007_s17 }
   0xe   : > { %p107_p6 = scmp.eq.s32.totalorder %s469_s15, 1  ;;  %p40_p7 = scmp.eq.s32.totalorder %s37_s20, 0 }
   0xf   : > { %p786_p8 = por %p56_p5, %p55_p3  ;;  %p113_p10 = scmp.eq.s32.totalorder %s470_s16, 1 }
  0x10   : > { %p790_p9 = por %p107_p6, %p49_p1  ;;  %p508_p13 = scmp.lt.s32.totalorder %s717_s14, 2 }
  0x11   : > { %s987_s21 = scalar_select %p786_p8, 1, 0 }
  0x12   : > { %s988_s22 = scalar_select %p790_p9, 1, 0 }
  0x13   : > { %s795_s23 = scalar_select %p40_p7, %s705_s11, %s42_s18  }
  0x14   : > { %p797_p11 = por %p113_p10, %p55_p3  ;;  %s804_s25 = sand.u32 1, %s705_s11  }
  0x15   : > { %s473_s26 = sshll.u32 %s804_s25, 3  ;;  %s488_s27 = sshll.u32 %s713_s13, 7 }
  0x16   : > { %s989_s24 = scalar_select %p797_p11, 1, 0 }
  0x17   : > { %s811_s30 = scalar_lea.hbm %s981_s0, %s488_s27  ;;  %s137_s3 = scalar_lea.vmem [#allocation2], %s473_s26 }
  0x18   : > { %s147_s4 = sshll.u32 %s137_s3, 4  ;;  %p817_p0 = pnand %p508_p13, %p780_p4  ;;  %s813_s4 = int_to_ptr.vmem [resolvable:$true] %s147_s4 }
  0x19   : > { %s134_s6 = scalar_lea.sflag [#allocation3], %s804_s25  ;;  %s571_s7 = scalar_lea.hbm %s811_s30, 128 }
  0x1a   : > { %p572_p3 = scmp.ne.s32.totalorder %s811_s30, %s571_s7  ;;  %p573_p5 = pneg %p817_p0 }
  0x1b   : > { %s576_s16 = scalar_lea.hbm %s981_s0, 256  ;;  %p577_p4 = scmp.lt.u32.totalorder %s811_s30, %s981_s0 }
  0x1c   : > { %p574_p6 = pnand %p573_p5, %p572_p3  ;;  %p578_p10 = scmp.lt.u32.totalorder %s576_s16, %s571_s7 }
  0x1d   : > { %p580_p12 = scmp.lt.u32.totalorder %s571_s7, %s811_s30 }
  0x1e   : > { %p575_p7 = pneg %p574_p6  ;;  %p579_p13 = por %p578_p10, %p577_p4 }
  0x20   : > { %p581_p1 = por %p580_p12, %p579_p13 }
  0x22   : > { %p582_p2 = pnand %p581_p1, %p575_p7 }
  0x24   : > { %585 = shalt.err (!%p582_p2)
}
  0x25   : > { %s586_s20 = scalar_lea.vmem %s813_s4, 128  ;;  %s719_s26 = smov [#allocation2]  }
  0x26   : > { %p587_p3 = scmp.ne.s32.totalorder %s813_s4, %s586_s20  ;;  %s591_s27 = sshll.u32 %s719_s26, 4  ;;  %s592_s27 = int_to_ptr.vmem [resolvable:$false] %s591_s27 }
  0x27   : > { %s593_s28 = scalar_lea.vmem %s592_s27, 256  ;;  %p594_p9 = scmp.lt.s32.totalorder %s813_s4, %s592_s27 }
  0x28   : > { %p589_p6 = pnand %p587_p3, %p573_p5  ;;  %p595_p4 = scmp.lt.s32.totalorder %s593_s28, %s586_s20 }
  0x2a   : > { %p590_p11 = pneg %p589_p6  ;;  %p596_p10 = por %p595_p4, %p594_p9 }
  0x2c   : > { %p597_p12 = pnand %p596_p10, %p590_p11 }
  0x2e   : > { %600 = shalt.err (!%p597_p12)
}
  0x2f   : > { %500 = dma.hbm_to_vmem [thread:$0]  (!%p817_p0), %s811_s30, 128, %s813_s4, %s134_s6  }
  0x30   : > { %p991_p1 = scmp.lt.s32.totalorder %s717_s14, 3  ;;  %p992_p2 = scmp.ge.s32.totalorder %s717_s14, 1 }
  0x31   : > { %s476_s3 = sshll.u32 %s804_s25, 1  ;;  %s489_s7 = sshll.u32 %s713_s13, 5 }
  0x32   : > { %p853_p7 = pnand %p992_p2, %p991_p1  ;;  %s862_s16 = scalar_lea.hbm %s982_s1, %s489_s7 }
  0x33   : > { %s158_s18 = scalar_lea.vmem [#allocation5], %s476_s3  ;;  %s155_s30 = scalar_lea.sflag [#allocation6], %s804_s25 }
  0x34   : > { %s993_s29 = scalar_select %p853_p7, 1, 0 }
  0x35   : > { %s168_s19 = sshll.u32 %s158_s18, 4  ;;  %s601_s4 = scalar_lea.hbm %s862_s16, 32  ;;  %s169_s19 = int_to_ptr.vmem [resolvable:$true] %s168_s19 }
  0x36   : > { %p602_p9 = scmp.ne.s32.totalorder %s862_s16, %s601_s4  ;;  %s606_s26 = scalar_lea.hbm %s982_s1, 64 }
  0x37   : > { %p607_p3 = scmp.lt.u32.totalorder %s862_s16, %s982_s1  ;;  %p608_p6 = scmp.lt.u32.totalorder %s606_s26, %s601_s4 }
  0x38   : > { %p604_p11 = pnand %p602_p9, %p573_p5  ;;  %p610_p10 = scmp.lt.u32.totalorder %s601_s4, %s862_s16 }
  0x39   : > { %p609_p4 = por %p608_p6, %p607_p3 }
  0x3a   : > { %p605_p13 = pneg %p604_p11 }
  0x3b   : > { %p611_p12 = por %p610_p10, %p609_p4 }
  0x3d   : > { %p612_p1 = pnand %p611_p12, %p605_p13 }
  0x3f   : > { %615 = shalt.err (!%p612_p1)
}
  0x40   : > { %s616_s25 = scalar_lea.vmem %s169_s19, 32  ;;  %s720_s3 = smov [#allocation5]  }
  0x41   : > { %p617_p2 = scmp.ne.s32.totalorder %s169_s19, %s616_s25  ;;  %s621_s7 = sshll.u32 %s720_s3, 4  ;;  %s622_s7 = int_to_ptr.vmem [resolvable:$false] %s621_s7 }
  0x42   : > { %s623_s8 = scalar_lea.vmem %s622_s7, 64  ;;  %p624_p8 = scmp.lt.s32.totalorder %s169_s19, %s622_s7 }
  0x43   : > { %p619_p9 = pnand %p617_p2, %p573_p5  ;;  %p625_p7 = scmp.lt.s32.totalorder %s623_s8, %s616_s25 }
  0x45   : > { %p620_p11 = pneg %p619_p9  ;;  %p626_p3 = por %p625_p7, %p624_p8 }
  0x47   : > { %p627_p6 = pnand %p626_p3, %p620_p11 }
  0x49   : > { %630 = shalt.err (!%p627_p6)
}
  0x4a   : > { %503 = dma.hbm_to_vmem [thread:$0]  (!%p817_p0), %s862_s16, 32, %s169_s19, %s155_s30  }
  0x4b   : > { %p994_p13 = scmp.ne.s32.totalorder %s993_s29, 0 }
  0x4c   : > { %s887_s15 = sand.u32 (!%p994_p13), 1, %s701_s10   ;;  %p995_p5 = scmp.ne.s32.totalorder (!%p994_p13), %s987_s21, 0 }
  0x4d   : > { %177 = sbr.rel (%p994_p13) target bundleno = 194 (0xc2), region = 28  ;;  %s480_s18 = sshll.u32 (!%p994_p13), %s887_s15, 3 }
  0x4e   : > { %s180_s4 = scalar_lea.sflag (!%p994_p13), [#allocation3], %s887_s15  ;;  %s183_s6 = scalar_lea.vmem (!%p994_p13), [#allocation2], %s480_s18 }
  0x54   : > { %684 = dma.done.wait (%p995_p5), %s180_s4, 128  }
  0x55   : > { %686 = vsyncadd (%p995_p5), %s180_s4, 4294967168  ;;  %s481_s5 = sshll.u32 %s887_s15, 1  ;;  %s189_s29 = scalar_lea.sflag [#allocation6], %s887_s15 }
  0x56   : > { %s192_s16 = scalar_lea.vmem [#allocation5], %s481_s5 }
  0x57   : > { %688 = dma.done.wait (%p995_p5), %s189_s29, 32  }
  0x58   : > { %690 = vsyncadd (%p995_p5), %s189_s29, 4294967264  ;;  %v224_v0 = vlaneseq  ;;  %s905_s19 = scalar_lea.vmem [#allocation7], %s481_s5  ;;  %v721_v2 = vmov 0.0   ;;  %vm234_vm1 = vcmask 1043456   ;;  %v229_v3 = vld [vmem:[%s183_s6] sm:$0xff]  ;;  %s490_s21 = sshll.u32 %s709_s12, 5 }
  0x59   : > { %v232_v4 = vcombine.high %v229_v3, %v229_v3  ;;  %v235_v5 = vsel %vm234_vm1, %v229_v3, -inf  ;;  %v230_v23 = vld [vmem:[%s192_s16] sm:$0x3]  ;;  %s362_s30 = sshll.u32 %s905_s19, 4  ;;  %s929_s27 = scalar_lea.hbm %s983_s2, %s490_s21  ;;  %s931_s30 = int_to_ptr.vmem [resolvable:$true] %s362_s30 }
  0x5a   : > { %vm901_vm0 = vcmp.lt.s32.totalorder %v224_v0, 256  ;;  %v236_v6 = vrot.slane %v235_v5, 4  ;;  %v912_v19 = vshrl.u32 %v224_v0, 7  ;;  %s348_s28 = scalar_lea.sflag [#allocation4], %s887_s15  ;;  %s631_s25 = scalar_lea.vmem %s931_s30, 32 }
  0x5b   : > { %228 = vst.msk [vmem:[%s905_s19] sm:$0x3] %vm901_vm0, %v721_v2  ;;  %v242_v7 = vsel %vm234_vm1, %v232_v4, -inf  ;;  %p632_p8 = scmp.ne.s32.totalorder %s931_s30, %s631_s25  ;;  %p998_p0 = scmp.ne.s32.totalorder %s988_s22, 0 }
  0x5c   : > { %v237_v8 = vmax.f32 %v235_v5, %v236_v6  ;;  %v243_v9 = vrot.slane %v242_v7, 4  ;;  %v277_v22 = vsub.s32 0, %v912_v19  ;;  %v281_v25 = vsub.s32 1, %v912_v19  ;;  %s723_s12 = smov [#allocation7]  }
  0x5d   : > { %p633_p7 = pnand %p632_p8, %p998_p0  ;;  %s635_s3 = sshll.u32 %s723_s12, 4  ;;  %s636_s3 = int_to_ptr.vmem [resolvable:$false] %s635_s3 }
  0x5e   : > { %v238_v10 = vrot.slane %v237_v8, 2  ;;  %v244_v11 = vmax.f32 %v242_v7, %v243_v9  ;;  %v278_v26 = vrot.slane %v230_v23, %v277_v22  ;;  %v282_v27 = vrot.slane %v230_v23, %v281_v25  ;;  %s637_s7 = scalar_lea.vmem %s636_s3, 64  ;;  %p638_p10 = scmp.lt.s32.totalorder %s931_s30, %s636_s3 }
  0x5f   : > { %p634_p4 = pneg %p633_p7  ;;  %p639_p12 = scmp.lt.s32.totalorder %s637_s7, %s631_s25 }
  0x60   : > { %v239_v12 = vmax.f32 %v237_v8, %v238_v10  ;;  %v245_v13 = vrot.slane %v244_v11, 2  ;;  %vm283_vm2 = vcmp.eq.s32.totalorder %v912_v19, %v278_v26  ;;  %vm284_vm3 = vcmp.eq.s32.totalorder %v912_v19, %v282_v27 }
  0x61   : > { %v722_v8 = vmov 1966171168   ;;  %p640_p1 = por %p639_p12, %p638_p10 }
  0x62   : > { %v240_v14 = vrot.slane %v239_v12, 1  ;;  %v246_v15 = vmax.f32 %v244_v11, %v245_v13  ;;  %v327_v9 = vunpack.c.l.s4 %v722_v8  ;;  %v322_v23 = vld [vmem:[%s905_s19] sm:$0x3] }
  0x63   : > { %p641_p2 = pnand %p640_p1, %p634_p4 }
  0x64   : > { %v241_v16 = vmax.f32 %v239_v12, %v240_v14  ;;  %v247_v17 = vrot.slane %v246_v15, 1 }
  0x66   : > { %v248_v18 = vmax.f32 %v246_v15, %v247_v17  ;;  %v328_v15 = vunpack.c.0.s8 %v327_v9 }
  0x68   : > { %v251_v20 = vcombine.low %v241_v16, %v248_v18 }
  0x6a   : > { %v253_v21 = vsub.f32 %v229_v3, %v251_v20  ;;  %v331_v20 = vsub.s32 %v328_v15, %v912_v19 }
  0x6c   : > { %v254_v24 = vmul.f32 1.442695, %v253_v21  ;;  %v286_v28 = vcombine.high %v253_v21, %v253_v21  ;;  %v288_v29 = vsel %vm283_vm2, %v253_v21, 0.0 }
  0x6d   : > { %v290_v32 = vsel %vm234_vm1, %v288_v29, 0.0 }
  0x6e   : > { %561 = vpow2.f32 %v254_v24  ;;  %v289_v30 = vsel %vm284_vm3, %v286_v28, 0.0  ;;  %v291_v38 = vrot.slane %v290_v32, 4 }
  0x6f   : > { %v297_v36 = vsel %vm234_vm1, %v289_v30, 0.0 }
  0x70   : > { %v298_v41 = vrot.slane %v297_v36, 4  ;;  %v292_v44 = vadd.f32 %v291_v38, %v290_v32 }
  0x72   : > { %v299_v47 = vadd.f32 %v298_v41, %v297_v36  ;;  %v293_v50 = vrot.slane %v292_v44, 2 }
  0x74   : > { %v300_v53 = vrot.slane %v299_v47, 2  ;;  %v294_v55 = vadd.f32 %v293_v50, %v292_v44 }
  0x76   : > { %v301_v56 = vadd.f32 %v300_v53, %v299_v47  ;;  %v295_v57 = vrot.slane %v294_v55, 1 }
  0x78   : > { %v562_v31 = vpop.eup %561  ;;  %v302_v58 = vrot.slane %v301_v56, 1  ;;  %v296_v59 = vadd.f32 %v295_v57, %v294_v55 }
  0x79   : > { %v257_v33 = vcombine.high %v562_v31, %v562_v31  ;;  %v259_v34 = vsel %vm234_vm1, %v562_v31, 0.0 }
  0x7a   : > { %v260_v35 = vrot.slane %v259_v34, 4  ;;  %v303_v61 = vadd.f32 %v302_v58, %v301_v56 }
  0x7b   : > { %v266_v37 = vsel %vm234_vm1, %v257_v33, 0.0 }
  0x7c   : > { %v261_v39 = vadd.f32 %v260_v35, %v259_v34  ;;  %v267_v40 = vrot.slane %v266_v37, 4 }
  0x7e   : > { %v262_v42 = vrot.slane %v261_v39, 2  ;;  %v268_v43 = vadd.f32 %v267_v40, %v266_v37 }
  0x80   : > { %v263_v45 = vadd.f32 %v262_v42, %v261_v39  ;;  %v269_v46 = vrot.slane %v268_v43, 2 }
  0x82   : > { %v264_v48 = vrot.slane %v263_v45, 1  ;;  %v270_v49 = vadd.f32 %v269_v46, %v268_v43 }
  0x84   : > { %v265_v51 = vadd.f32 %v264_v48, %v263_v45  ;;  %v271_v52 = vrot.slane %v270_v49, 1 }
  0x86   : > { %v272_v54 = vadd.f32 %v271_v52, %v270_v49  ;;  %563 = vlog2.f32 %v265_v51 }
  0x88   : > { %565 = vlog2.f32 %v272_v54 }
  0x90   : > { %v564_v60 = vpop.eup %563 }
  0x91   : > { %v305_v62 = vmul.f32 0.6931472, %v564_v60 }
  0x92   : > { %v566_v63 = vpop.eup %565 }
  0x93   : > { %v307_v0 = vmul.f32 0.6931472, %v566_v63  ;;  %v308_v2 = vsub.f32 %v305_v62, %v296_v59 }
  0x95   : > { %v309_v3 = vsub.f32 %v307_v0, %v303_v61  ;;  %v310_v4 = vsub.f32 0.0, %v308_v2 }
  0x97   : > { %v311_v5 = vsub.f32 0.0, %v309_v3  ;;  %v312_v6 = vmul.f32 1.442695, %v310_v4 }
  0x99   : > { %567 = vpow2.f32 %v312_v6  ;;  %v314_v7 = vmul.f32 1.442695, %v311_v5 }
  0x9b   : > { %569 = vpow2.f32 %v314_v7 }
  0xa3   : > { %v568_v10 = vpop.eup %567 }
  0xa4   : > { %v316_v11 = vsub.f32 1.0, %v568_v10 }
  0xa5   : > { %v570_v12 = vpop.eup %569 }
  0xa6   : > { %v317_v13 = vsub.f32 1.0, %v570_v12  ;;  %v318_v14 = vmul.f32 %v316_v11, %v316_v11 }
  0xa8   : > { %v319_v16 = vmul.f32 %v317_v13, %v317_v13  ;;  %v320_v17 = vmul.f32 %v318_v14, %v308_v2 }
  0xaa   : > { %v321_v18 = vmul.f32 %v319_v16, %v309_v3 }
  0xac   : > { %v325_v21 = vcombine.low %v320_v17, %v321_v18 }
  0xae   : > { %v332_v22 = vrot.slane %v325_v21, %v331_v20 }
  0xb0   : > { %v339_v24 = vrot.slane %v332_v22, %v331_v20 }
  0xb2   : > { %v341_v25 = vadd.f32 %v339_v24, %v322_v23 }
  0xb4   : > { %346 = vst.msk [vmem:[%s905_s19] sm:$0x3] %vm901_vm0, %v341_v25 }
  0xb5   : > { %644 = shalt.err (!%p641_p2)
}
  0xb6   : > { %s645_s8 = scalar_lea.hbm %s929_s27, 32  ;;  %s649_s4 = scalar_lea.hbm %s983_s2, 64 }
  0xb7   : > { %p646_p9 = scmp.ne.s32.totalorder %s929_s27, %s645_s8  ;;  %p650_p6 = scmp.lt.u32.totalorder %s929_s27, %s983_s2 }
  0xb8   : > { %p651_p13 = scmp.lt.u32.totalorder %s649_s4, %s645_s8  ;;  %p653_p8 = scmp.lt.u32.totalorder %s645_s8, %s929_s27 }
  0xb9   : > { %p647_p11 = pnand %p646_p9, %p998_p0 }
  0xba   : > { %p652_p5 = por %p651_p13, %p650_p6 }
  0xbb   : > { %p648_p3 = pneg %p647_p11 }
  0xbc   : > { %p654_p7 = por %p653_p8, %p652_p5 }
  0xbe   : > { %p655_p4 = pnand %p654_p7, %p648_p3 }
  0xc0   : > { %658 = shalt.err (!%p655_p4)
}
  0xc1   : > { %495 = dma.vmem_to_hbm [thread:$0]  (%p998_p0), %s931_s30, 32, %s929_s27, %s348_s28  }
  0xc2 PF: > { %s374_s29 = sand.u32 1, %s697_s9   ;;  %p999_p10 = scmp.ne.s32.totalorder %s989_s24, 0 }
  0xc3   : > { %p1000_p12 = scmp.ge.s32.totalorder %s717_s14, 2  ;;  %s375_s16 = scalar_lea.sflag [#allocation4], %s374_s29 }
  0xc5   : > { %p505_p1 = pnand %p1000_p12, %p999_p10 }
  0xc7   : > { %692 = dma.done.wait (!%p505_p1), %s375_s16, 32  }
  0xc8   : > { %694 = vsyncadd (!%p505_p1), %s375_s16, 4294967264  ;;  %s21_s14 = sadd.s32 1, %s717_s14   ;;  %s1001_s9 = smov %s701_s10 }
  0xc9   : > { %p18_p2 = scmp.ge.s32.totalorder %s21_s14, 4   ;;  %s1002_s10 = smov %s705_s11 }
  0xca   : > { %s1003_s11 = smov %s795_s23  ;;  %s1004_s12 = smov %s713_s13 }
  0xcb   : > { %s1005_s13 = smov %s1007_s17  ;;  %20 = sbr.rel (!%p18_p2) target bundleno = 8 (0x8), region = 90 }
  0xd2   :  { %380 = vsyncpa [#allocation3], 1 }
  0xd3   :  { %382 = vsyncpa [#allocation3 + $0x1], 1 }
  0xd4   :  { %383 = vsyncpa [#allocation6], 1 }
  0xd5   :  { %385 = vsyncpa [#allocation6 + $0x1], 1 }
  0xd6   :  { %386 = vsyncpa [#allocation4], 1 }
  0xd7   :  { %388 = vsyncpa [#allocation4 + $0x1], 1 }

</bundles_post_ra>
